<compile_context>
chip_gen: v7x
topology: tpu7x:2x2x1
jax: 0.10.0
libtpu: 0.0.40
codegen_flags: <defaults>
</compile_context>

<pallas_src>
import functools

import jax
import jax.numpy as jnp
from jax.experimental import pallas as pl
from jax.experimental.pallas import tpu as pltpu


def _tpu_vmem_and_cores():
    """Physical VMEM bytes and TensorCores/chip (conservative fallbacks)."""
    vmem = 64 * 1024 * 1024  # conservative default (v7x-sized)
    try:
        info = pltpu.get_tpu_info()
        vmem = int(getattr(info, "vmem_capacity_bytes", vmem))
    except Exception:
        pass
    # ~64 MiB VMEM parts (v7x) have 2 TensorCores; 128 MiB parts (v5e/v6e) have 1.
    num_tc = 2 if vmem <= 96 * 1024 * 1024 else 1
    return vmem, num_tc


def _dyrelu_kernel(x_ref, w1_ref, b1_ref, w2_ref, b2_ref, o_ref, *,
                   hw_true, lambda_a, init_a, init_b, ew_dtype):
    # x_ref: (Bblk, C, HW)   o_ref: (Bblk, C, HW)
    # w1_ref: (C, S); b1_ref: (1, S); w2_ref: (S, 4C); b2_ref: (1, 4C)
    C = x_ref.shape[1]

    # --- global average pool over the true spatial extent (f32 accumulate) ---
    pooled = jnp.sum(x_ref[...].astype(jnp.float32), axis=2)        # (Bblk, C)
    y = pooled * (1.0 / hw_true)

    # --- fc: Linear -> ReLU -> Linear -> h_sigmoid (tiny, keep f32) ----------
    h = jnp.dot(y, w1_ref[...].astype(jnp.float32),
                preferred_element_type=jnp.float32)
    h = jnp.maximum(h + b1_ref[...].astype(jnp.float32), 0.0)       # (Bblk, S)
    z = jnp.dot(h, w2_ref[...].astype(jnp.float32),
                preferred_element_type=jnp.float32)
    z = z + b2_ref[...].astype(jnp.float32)
    z = jnp.clip(z + 3.0, 0.0, 6.0) * (1.0 / 6.0)                   # h_sigmoid

    # --- split & transform coefficients (exp == 4 path) ----------------------
    a1 = (z[:, 0 * C:1 * C] - 0.5) * lambda_a + init_a[0]
    b1c = (z[:, 1 * C:2 * C] - 0.5) + init_b[0]
    a2 = (z[:, 2 * C:3 * C] - 0.5) * lambda_a + init_a[1]
    b2c = (z[:, 3 * C:4 * C] - 0.5) + init_b[1]

    # Cast coefficients ONCE to the element-wise compute dtype (hoisted out of
    # the per-pixel expression), then broadcast along the lane (spatial) axis.
    a1e = a1.astype(ew_dtype)[:, :, None]
    b1e = b1c.astype(ew_dtype)[:, :, None]
    a2e = a2.astype(ew_dtype)[:, :, None]
    b2e = b2c.astype(ew_dtype)[:, :, None]

    # --- per-pixel dynamic ReLU: max of two affine branches -------------------
    xv = x_ref[...].astype(ew_dtype)        # identity when ew_dtype == x dtype
    out = jnp.maximum(xv * a1e + b1e, xv * a2e + b2e)
    o_ref[...] = out.astype(o_ref.dtype)


def dyrelu_forward(x, w1, b1, w2, b2, *, lambda_a=2.0,
                   init_a=(1.0, 0.0), init_b=(0.0, 0.0)):
    """DYReLU forward. x: (B, C, H, W) NCHW, returns same shape & dtype.

    For inference paths, feeding bf16 x halves HBM traffic and keeps the
    element-wise pass in bf16 (the pooled sum and the MLP stay in f32).
    """
    B, C, H, W = x.shape
    HW = H * W
    S = w1.shape[1]

    xdt = jnp.dtype(x.dtype)
    itemsize = xdt.itemsize
    # Element-wise compute dtype: native for f32/bf16, otherwise widen to f32.
    if xdt in (jnp.dtype(jnp.float32), jnp.dtype(jnp.bfloat16)):
        ew_dtype = x.dtype
    else:
        ew_dtype = jnp.float32

    # Free metadata reshape (no HBM pass): kernel works on (B, C, H*W).
    x_flat = x.reshape(B, C, HW)
    b1_2d = b1.reshape(1, S)
    b2_2d = b2.reshape(1, 4 * C)

    # --- per-chip block sizing ------------------------------------------------
    vmem_cap, num_tc = _tpu_vmem_and_cores()
    weight_bytes = int(w1.size + b1.size + w2.size + b2.size) * 4

    per_batch_in_bytes = C * HW * itemsize
    # Bytes charged per batch element: double-buffered in + out blocks plus
    # f32 temporary headroom for the pooled reduce / element-wise pass.
    per_batch_cost = 4 * per_batch_in_bytes + 2 * C * HW * 4

    budget = min(int(0.75 * vmem_cap), 96 * 1024 * 1024) - weight_bytes - (2 << 20)
    bblk_cap = max(1, budget // per_batch_cost)

    # Bigger blocks on single-TC parts (128 MiB VMEM); smaller on dual-TC v7x.
    target_block_bytes = (20 << 20) if num_tc == 1 else (6 << 20)
    bblk_cap = min(bblk_cap, max(1, target_block_bytes // per_batch_in_bytes))

    if num_tc == 2 and B >= 2:
        # Keep >= min(B, 4) grid steps so both TensorCores get pipelined work.
        bblk_cap = min(bblk_cap, max(1, B // min(B, 4)))

    Bblk = int(max(1, min(B, bblk_cap)))
    grid_b = pl.cdiv(B, Bblk)          # ragged batch OK: rows are independent

    # --- explicit VMEM limit (double-buffered blocks + temps + weights) ------
    block_in_bytes = Bblk * per_batch_in_bytes
    block_f32_bytes = Bblk * C * HW * 4
    vmem_limit = 4 * block_in_bytes + 2 * block_f32_bytes + weight_bytes + (2 << 20)
    vmem_limit = int(min(max(vmem_limit, 32 << 20), int(0.75 * vmem_cap)))

    kernel = functools.partial(
        _dyrelu_kernel, hw_true=float(HW), lambda_a=float(lambda_a),
        init_a=tuple(float(v) for v in init_a),
        init_b=tuple(float(v) for v in init_b),
        ew_dtype=ew_dtype)

    out = pl.pallas_call(
        kernel,
        out_shape=jax.ShapeDtypeStruct((B, C, HW), x.dtype),
        grid_spec=pltpu.PrefetchScalarGridSpec(
            num_scalar_prefetch=0,
            grid=(grid_b,),
            in_specs=[
                # Trailing two block dims == full array dims (C, HW): legal even
                # when HW is not a multiple of 128; no host-side pad/crop needed.
                pl.BlockSpec((Bblk, C, HW), lambda i: (i, 0, 0)),   # x block
                pl.BlockSpec((C, S), lambda i: (0, 0)),             # W1 (resident)
                pl.BlockSpec((1, S), lambda i: (0, 0)),             # b1
                pl.BlockSpec((S, 4 * C), lambda i: (0, 0)),         # W2
                pl.BlockSpec((1, 4 * C), lambda i: (0, 0)),         # b2
            ],
            out_specs=pl.BlockSpec((Bblk, C, HW), lambda i: (i, 0, 0)),
        ),
        compiler_params=pltpu.CompilerParams(
            dimension_semantics=("parallel",),
            vmem_limit_bytes=vmem_limit),
    )(x_flat, w1, b1_2d, w2, b2_2d)

    return out.reshape(B, C, H, W)


def _reference_dyrelu(x, w1, b1, w2, b2, *, lambda_a=2.0,
                      init_a=(1.0, 0.0), init_b=(0.0, 0.0)):
    """Plain-JAX reference mirroring the PyTorch forward (exp == 4)."""
    y = jnp.mean(x, axis=(2, 3))                         # (B, C) avg pool
    h = jnp.maximum(y @ w1 + b1, 0.0)
    z = h @ w2 + b2
    z = jnp.clip(z + 3.0, 0.0, 6.0) / 6.0
    a1, bb1, a2, bb2 = jnp.split(z, 4, axis=1)
    a1 = (a1 - 0.5) * lambda_a + init_a[0]
    a2 = (a2 - 0.5) * lambda_a + init_a[1]
    bb1 = bb1 - 0.5 + init_b[0]
    bb2 = bb2 - 0.5 + init_b[1]
    a1 = a1[:, :, None, None]; a2 = a2[:, :, None, None]
    bb1 = bb1[:, :, None, None]; bb2 = bb2[:, :, None, None]
    return jnp.maximum(x * a1 + bb1, x * a2 + bb2)


if __name__ == "__main__":
    # Module config (defaults): inp = oup = C, reduction = 4, K2=True,
    # use_bias=True -> exp = 4; lambda_a = 1.0 * 2 = 2.0.
    # H=W=14 deliberately exercises the non-128-multiple spatial extent
    # (true-HW trailing block dim, masked partial stores, no pad/crop).
    B, C, H, W = 4, 16, 14, 14
    squeeze = C // 4                                     # reduction == 4 path
    exp = 4

    key = jax.random.PRNGKey(0)
    k_x, k_w1, k_b1, k_w2, k_b2 = jax.random.split(key, 5)

    x = jax.random.normal(k_x, (B, C, H, W), dtype=jnp.float32)

    # Deterministic synthetic parameters (Linear weights stored as (in, out)).
    w1 = jax.random.normal(k_w1, (C, squeeze), dtype=jnp.float32) * 0.2
    b1 = jax.random.normal(k_b1, (squeeze,), dtype=jnp.float32) * 0.1
    w2 = jax.random.normal(k_w2, (squeeze, C * exp), dtype=jnp.float32) * 0.2
    b2 = jax.random.normal(k_b2, (C * exp,), dtype=jnp.float32) * 0.1

    out = jax.block_until_ready(dyrelu_forward(x, w1, b1, w2, b2))

    ref = _reference_dyrelu(x, w1, b1, w2, b2)
    assert out.shape == (B, C, H, W)
    assert jnp.allclose(out, ref, atol=1e-5, rtol=1e-5), "mismatch vs reference"

    print("KERNEL_OK")
</pallas_src>

<mosaic_0001>
module attributes {stable_mosaic.version = 11 : i64} {
  func.func @_dyrelu_kernel(%arg0: i32, %arg1: memref<1x16x196xf32, #tpu.memory_space<vmem>>, %arg2: memref<16x4xf32, #tpu.memory_space<vmem>>, %arg3: memref<1x4xf32, #tpu.memory_space<vmem>>, %arg4: memref<4x64xf32, #tpu.memory_space<vmem>>, %arg5: memref<1x64xf32, #tpu.memory_space<vmem>>, %arg6: memref<1x16x196xf32, #tpu.memory_space<vmem>>) attributes {dimension_semantics = [#tpu.dimension_semantics<parallel>], iteration_bounds = array<i64: 4>, scalar_prefetch = 0 : i64, scratch_operands = 0 : i64, tpu.core_type = #tpu.core_type<tc>, window_params = [{transform_indices = @transform_0, window_bounds = array<i64: 1, 16, 196>}, {pipeline_mode = #tpu.pipeline_mode<synchronous>, transform_indices = @transform_1, window_bounds = array<i64: 16, 4>}, {pipeline_mode = #tpu.pipeline_mode<synchronous>, transform_indices = @transform_2, window_bounds = array<i64: 1, 4>}, {pipeline_mode = #tpu.pipeline_mode<synchronous>, transform_indices = @transform_3, window_bounds = array<i64: 4, 64>}, {pipeline_mode = #tpu.pipeline_mode<synchronous>, transform_indices = @transform_4, window_bounds = array<i64: 1, 64>}, {transform_indices = @transform_5, window_bounds = array<i64: 1, 16, 196>}]} {
    %c0 = arith.constant 0 : index
    %c0_0 = arith.constant 0 : index
    %c0_1 = arith.constant 0 : index
    %0 = vector.load %arg1[%c0, %c0_0, %c0_1] : memref<1x16x196xf32, #tpu.memory_space<vmem>>, vector<1x16x196xf32>
    %cst = arith.constant dense<0.000000e+00> : vector<1x16xf32>
    %1 = vector.multi_reduction <add>, %0, %cst [2] : vector<1x16x196xf32> to vector<1x16xf32>
    %cst_2 = arith.constant 0.00510204071 : f32
    %2 = vector.broadcast %cst_2 : f32 to vector<1x16xf32>
    %3 = arith.mulf %1, %2 : vector<1x16xf32>
    %c0_3 = arith.constant 0 : index
    %c0_4 = arith.constant 0 : index
    %4 = vector.load %arg2[%c0_3, %c0_4] : memref<16x4xf32, #tpu.memory_space<vmem>>, vector<16x4xf32>
    %cst_5 = arith.constant dense<0.000000e+00> : vector<1x4xf32>
    %5 = tpu.matmul %3, %4, %cst_5 {dimension_numbers = #tpu.dot_dimension_numbers<[1], [0], [0], [1], [0, 0, 1, 1], [], []>} : vector<1x16xf32>, vector<16x4xf32>, vector<1x4xf32> -> vector<1x4xf32>
    %c0_6 = arith.constant 0 : index
    %c0_7 = arith.constant 0 : index
    %6 = vector.load %arg3[%c0_6, %c0_7] : memref<1x4xf32, #tpu.memory_space<vmem>>, vector<1x4xf32>
    %7 = arith.addf %5, %6 : vector<1x4xf32>
    %cst_8 = arith.constant 0.000000e+00 : f32
    %8 = vector.broadcast %cst_8 : f32 to vector<1x4xf32>
    %9 = arith.maximumf %7, %8 : vector<1x4xf32>
    %c0_9 = arith.constant 0 : index
    %c0_10 = arith.constant 0 : index
    %10 = vector.load %arg4[%c0_9, %c0_10] : memref<4x64xf32, #tpu.memory_space<vmem>>, vector<4x64xf32>
    %cst_11 = arith.constant dense<0.000000e+00> : vector<1x64xf32>
    %11 = tpu.matmul %9, %10, %cst_11 {dimension_numbers = #tpu.dot_dimension_numbers<[1], [0], [0], [1], [0, 0, 1, 1], [], []>} : vector<1x4xf32>, vector<4x64xf32>, vector<1x64xf32> -> vector<1x64xf32>
    %c0_12 = arith.constant 0 : index
    %c0_13 = arith.constant 0 : index
    %12 = vector.load %arg5[%c0_12, %c0_13] : memref<1x64xf32, #tpu.memory_space<vmem>>, vector<1x64xf32>
    %13 = arith.addf %11, %12 : vector<1x64xf32>
    %cst_14 = arith.constant 3.000000e+00 : f32
    %14 = vector.broadcast %cst_14 : f32 to vector<1x64xf32>
    %15 = arith.addf %13, %14 : vector<1x64xf32>
    %cst_15 = arith.constant 0.000000e+00 : f32
    %cst_16 = arith.constant 6.000000e+00 : f32
    %16 = vector.broadcast %cst_15 : f32 to vector<1x64xf32>
    %17 = arith.maximumf %16, %15 : vector<1x64xf32>
    %18 = vector.broadcast %cst_16 : f32 to vector<1x64xf32>
    %19 = arith.minimumf %18, %17 : vector<1x64xf32>
    %cst_17 = arith.constant 0.166666672 : f32
    %20 = vector.broadcast %cst_17 : f32 to vector<1x64xf32>
    %21 = arith.mulf %19, %20 : vector<1x64xf32>
    %22 = vector.extract_strided_slice %21 {offsets = [0, 0], sizes = [1, 16], strides = [1, 1]} : vector<1x64xf32> to vector<1x16xf32>
    %cst_18 = arith.constant 5.000000e-01 : f32
    %23 = vector.broadcast %cst_18 : f32 to vector<1x16xf32>
    %24 = arith.subf %22, %23 : vector<1x16xf32>
    %cst_19 = arith.constant 2.000000e+00 : f32
    %25 = vector.broadcast %cst_19 : f32 to vector<1x16xf32>
    %26 = arith.mulf %24, %25 : vector<1x16xf32>
    %cst_20 = arith.constant 1.000000e+00 : f32
    %27 = vector.broadcast %cst_20 : f32 to vector<1x16xf32>
    %28 = arith.addf %26, %27 : vector<1x16xf32>
    %29 = vector.extract_strided_slice %21 {offsets = [0, 16], sizes = [1, 16], strides = [1, 1]} : vector<1x64xf32> to vector<1x16xf32>
    %cst_21 = arith.constant 5.000000e-01 : f32
    %30 = vector.broadcast %cst_21 : f32 to vector<1x16xf32>
    %31 = arith.subf %29, %30 : vector<1x16xf32>
    %cst_22 = arith.constant 0.000000e+00 : f32
    %32 = vector.broadcast %cst_22 : f32 to vector<1x16xf32>
    %33 = arith.addf %31, %32 : vector<1x16xf32>
    %34 = vector.extract_strided_slice %21 {offsets = [0, 32], sizes = [1, 16], strides = [1, 1]} : vector<1x64xf32> to vector<1x16xf32>
    %cst_23 = arith.constant 5.000000e-01 : f32
    %35 = vector.broadcast %cst_23 : f32 to vector<1x16xf32>
    %36 = arith.subf %34, %35 : vector<1x16xf32>
    %cst_24 = arith.constant 2.000000e+00 : f32
    %37 = vector.broadcast %cst_24 : f32 to vector<1x16xf32>
    %38 = arith.mulf %36, %37 : vector<1x16xf32>
    %cst_25 = arith.constant 0.000000e+00 : f32
    %39 = vector.broadcast %cst_25 : f32 to vector<1x16xf32>
    %40 = arith.addf %38, %39 : vector<1x16xf32>
    %41 = vector.extract_strided_slice %21 {offsets = [0, 48], sizes = [1, 16], strides = [1, 1]} : vector<1x64xf32> to vector<1x16xf32>
    %cst_26 = arith.constant 5.000000e-01 : f32
    %42 = vector.broadcast %cst_26 : f32 to vector<1x16xf32>
    %43 = arith.subf %41, %42 : vector<1x16xf32>
    %cst_27 = arith.constant 0.000000e+00 : f32
    %44 = vector.broadcast %cst_27 : f32 to vector<1x16xf32>
    %45 = arith.addf %43, %44 : vector<1x16xf32>
    %46 = vector.shape_cast %28 : vector<1x16xf32> to vector<1x16x1xf32>
    %47 = vector.shape_cast %33 : vector<1x16xf32> to vector<1x16x1xf32>
    %48 = vector.shape_cast %40 : vector<1x16xf32> to vector<1x16x1xf32>
    %49 = vector.shape_cast %45 : vector<1x16xf32> to vector<1x16x1xf32>
    %c0_28 = arith.constant 0 : index
    %c0_29 = arith.constant 0 : index
    %c0_30 = arith.constant 0 : index
    %50 = vector.load %arg1[%c0_28, %c0_29, %c0_30] : memref<1x16x196xf32, #tpu.memory_space<vmem>>, vector<1x16x196xf32>
    %51 = vector.broadcast %46 : vector<1x16x1xf32> to vector<1x16x196xf32>
    %52 = arith.mulf %50, %51 : vector<1x16x196xf32>
    %53 = vector.broadcast %47 : vector<1x16x1xf32> to vector<1x16x196xf32>
    %54 = arith.addf %52, %53 : vector<1x16x196xf32>
    %55 = vector.broadcast %48 : vector<1x16x1xf32> to vector<1x16x196xf32>
    %56 = arith.mulf %50, %55 : vector<1x16x196xf32>
    %57 = vector.broadcast %49 : vector<1x16x1xf32> to vector<1x16x196xf32>
    %58 = arith.addf %56, %57 : vector<1x16x196xf32>
    %59 = arith.maximumf %54, %58 : vector<1x16x196xf32>
    %c0_31 = arith.constant 0 : index
    %c0_32 = arith.constant 0 : index
    %c0_33 = arith.constant 0 : index
    %60 = vector.load %arg6[%c0_31, %c0_32, %c0_33] : memref<1x16x196xf32, #tpu.memory_space<vmem>>, vector<1x16x196xf32>
    tpu.vector_store %arg6[%c0_31, %c0_32, %c0_33], %59 {strides = array<i32>} : memref<1x16x196xf32, #tpu.memory_space<vmem>>, vector<1x16x196xf32>,
    return
  }
  func.func @transform_0(%arg0: i32) -> (i32, i32, i32) {
    %c0_i32 = arith.constant 0 : i32
    %c0_i32_0 = arith.constant 0 : i32
    %c0_i32_1 = arith.constant 0 : i32
    return %arg0, %c0_i32, %c0_i32_0 : i32, i32, i32
  }
  func.func @transform_1(%arg0: i32) -> (i32, i32) {
    %c0_i32 = arith.constant 0 : i32
    %c0_i32_0 = arith.constant 0 : i32
    %c0_i32_1 = arith.constant 0 : i32
    return %c0_i32, %c0_i32_0 : i32, i32
  }
  func.func @transform_2(%arg0: i32) -> (i32, i32) {
    %c0_i32 = arith.constant 0 : i32
    %c0_i32_0 = arith.constant 0 : i32
    %c0_i32_1 = arith.constant 0 : i32
    return %c0_i32, %c0_i32_0 : i32, i32
  }
  func.func @transform_3(%arg0: i32) -> (i32, i32) {
    %c0_i32 = arith.constant 0 : i32
    %c0_i32_0 = arith.constant 0 : i32
    %c0_i32_1 = arith.constant 0 : i32
    return %c0_i32, %c0_i32_0 : i32, i32
  }
  func.func @transform_4(%arg0: i32) -> (i32, i32) {
    %c0_i32 = arith.constant 0 : i32
    %c0_i32_0 = arith.constant 0 : i32
    %c0_i32_1 = arith.constant 0 : i32
    return %c0_i32, %c0_i32_0 : i32, i32
  }
  func.func @transform_5(%arg0: i32) -> (i32, i32, i32) {
    %c0_i32 = arith.constant 0 : i32
    %c0_i32_0 = arith.constant 0 : i32
    %c0_i32_1 = arith.constant 0 : i32
    return %arg0, %c0_i32, %c0_i32_0 : i32, i32, i32
  }
}

</mosaic_0001>

<bundles_post_ra>
// kernel: tpu_custom_call.1
= control target key start
LH: loop header
LB: loop body
LE: loop exit
PB: predicated region body
PF: predicated region fallthrough
CT: control target
= control target key end

     0   :  { %10 = vsyncpa [#allocation3], 0  ;;  %s1026_s0 = inlined_call_operand.hbm [shape: f32[4,16,196], index: 0, kind: input, shape index: {}]   ;;  %s1027_s1 = inlined_call_operand.vmem [shape: f32[16,4], index: 1, kind: input, shape index: {}]   ;;  %s1028_s2 = inlined_call_operand.vmem [shape: f32[1,4], index: 2, kind: input, shape index: {}]   ;;  %s1029_s3 = inlined_call_operand.vmem [shape: f32[4,64], index: 3, kind: input, shape index: {}]   ;;  %s1030_s4 = inlined_call_operand.vmem [shape: f32[1,64], index: 4, kind: input, shape index: {}]   ;;  %s1031_s5 = inlined_call_operand.hbm [shape: f32[4,16,196], index: 5, kind: output, shape index: {}]  }
   0x1   :  { %12 = vsyncpa [#allocation3 + $0x1], 0 }
   0x2   :  { %13 = vsyncpa [#allocation4], 0 }
   0x3   :  { %15 = vsyncpa [#allocation4 + $0x1], 0  ;;  %s823_s18 = smov 0   ;;  %s825_s19 = smov 0  }
   0x4   :  { %s827_s20 = smov 0   ;;  %s829_s21 = smov 0  }
   0x5 LB: > { %s844_s22 = sadd.s32 4294967295, %s782_s21   ;;  %s593_s23 = sadd.s32 4294967294, %s782_s21   ;;  %s782_s21 = sphi %s829_s21, %s1043_s21   ;;  %s778_s20 = sphi %s827_s20, %s1042_s20   ;;  %s774_s19 = sphi %s825_s19, %s1041_s19   ;;  %s770_s18 = sphi %s823_s18, %s1040_s18  }
   0x6   : > { %s848_s24 = sadd.s32 1, %s782_s21   ;;  %s28_s25 = sadd.s32 1, %s778_s20 }
   0x7   : > { %s25_s26 = ssub.s32 %s782_s21, %s848_s24  ;;  %p35_p0 = scmp.ne.s32.totalorder %s778_s20, %s774_s19 }
   0x8   : > { %p26_p1 = scmp.eq.s32.totalorder %s25_s26, 0  ;;  %p36_p2 = scmp.eq.s32.totalorder %s782_s21, 0 }
   0x9   : > { %p41_p3 = scmp.ne.s32.totalorder %s774_s19, %s770_s18  ;;  %p42_p4 = scmp.eq.s32.totalorder %s844_s22, 0 }
   0xa   : > { %s860_s27 = scalar_select %p26_p1, %s778_s20, %s28_s25  }
   0xb   : > { %p862_p5 = por %p36_p2, %p35_p0  ;;  %p866_p6 = por %p42_p4, %p41_p3 }
   0xc   : > { %p149_p7 = scmp.eq.s32.totalorder %s844_s22, 3  ;;  %p155_p8 = scmp.eq.s32.totalorder %s593_s23, 3 }
   0xd   : > { %p645_p9 = scmp.lt.s32.totalorder %s782_s21, 4  ;;  %s187_s7 = sand.u32 1, %s778_s20  }
   0xe   : > { %p872_p10 = por %p149_p7, %p35_p0  ;;  %p876_p11 = por %p155_p8, %p41_p3 }
   0xf   : > { %s611_s8 = sshll.u32 %s782_s21, 9  ;;  %s596_s9 = sshll.u32 %s187_s7, 5 }
  0x10   : > { %s1035_s30 = scalar_select %p872_p10, 1, 0 }
  0x11   : > { %s1036_s6 = scalar_select %p876_p11, 1, 0 }
  0x12   : > { %s885_s12 = scalar_lea.hbm %s1026_s0, %s611_s8  ;;  %s191_s13 = scalar_lea.vmem [#allocation2], %s596_s9 }
  0x13   : > { %s198_s14 = sshll.u32 %s191_s13, 4  ;;  %p889_p12 = pnand %p645_p9, %p862_p5  ;;  %s893_s14 = int_to_ptr.vmem [resolvable:$true] %s198_s14 }
  0x14   : > { %s895_s16 = scalar_lea.sflag [#allocation3], %s187_s7  ;;  %s686_s17 = scalar_lea.hbm %s885_s12, 512 }
  0x15   : > { %p687_p13 = scmp.ne.s32.totalorder %s885_s12, %s686_s17  ;;  %p688_p0 = pneg %p889_p12 }
  0x16   : > { %s691_s26 = scalar_lea.hbm %s1026_s0, 2048  ;;  %p692_p3 = scmp.lt.u32.totalorder %s885_s12, %s1026_s0 }
  0x17   : > { %p689_p1 = pnand %p688_p0, %p687_p13  ;;  %p693_p4 = scmp.lt.u32.totalorder %s691_s26, %s686_s17 }
  0x18   : > { %p695_p7 = scmp.lt.u32.totalorder %s686_s17, %s885_s12 }
  0x19   : > { %p690_p2 = pneg %p689_p1  ;;  %p694_p5 = por %p693_p4, %p692_p3 }
  0x1b   : > { %p696_p8 = por %p695_p7, %p694_p5 }
  0x1d   : > { %p697_p9 = pnand %p696_p8, %p690_p2 }
  0x1f   : > { %700 = shalt.err (!%p697_p9)
}
  0x20   : > { %s701_s7 = scalar_lea.vmem %s893_s14, 512  ;;  %s784_s9 = smov [#allocation2]  }
  0x21   : > { %p702_p13 = scmp.ne.s32.totalorder %s893_s14, %s701_s7  ;;  %s706_s10 = sshll.u32 %s784_s9, 4  ;;  %s707_s10 = int_to_ptr.vmem [resolvable:$false] %s706_s10 }
  0x22   : > { %s708_s11 = scalar_lea.vmem %s707_s10, 1024  ;;  %p709_p10 = scmp.lt.s32.totalorder %s893_s14, %s707_s10 }
  0x23   : > { %p704_p1 = pnand %p702_p13, %p688_p0  ;;  %p710_p3 = scmp.lt.s32.totalorder %s708_s11, %s701_s7 }
  0x25   : > { %p705_p11 = pneg %p704_p1  ;;  %p711_p4 = por %p710_p3, %p709_p10 }
  0x27   : > { %p712_p5 = pnand %p711_p4, %p705_p11 }
  0x29   : > { %715 = shalt.err (!%p712_p5)
}
  0x2a   : > { %s785_s13 = smov 256   ;;  %s786_s17 = smov 16  }
  0x2b   : > { %640 = dma.hbm_to_vmem [thread:$0]  (!%p889_p12), %s885_s12, 512, %s893_s14, %s895_s16, %s785_s13, %s785_s13, %s786_s17  }
  0x2c   : > { %p599_p0 = scmp.ge.s32.totalorder %s782_s21, 1  ;;  %p206_p2 = scmp.lt.s32.totalorder %s782_s21, 5 }
  0x2e   : > { %p207_p7 = pnand %p599_p0, %p206_p2 }
  0x2f   : > { %s926_s23 = sand.u32 (!%p207_p7), 1, %s774_s19  }
  0x30   : > { %210 = sbr.rel (%p207_p7) target bundleno = 811 (0x32b), region = 40  ;;  %s600_s25 = sshll.u32 (!%p207_p7), %s926_s23, 5 }
  0x31   : > { %s213_s26 = scalar_lea.sflag (!%p207_p7), [#allocation3], %s926_s23  ;;  %s216_s28 = scalar_lea.vmem (!%p207_p7), [#allocation2], %s600_s25 }
  0x37   : > { %761 = dma.done.wait (%p866_p6), %s213_s26, 512  }
  0x38   : > { %763 = vsyncadd (%p866_p6), %s213_s26, 4294966784  ;;  %vm247_vm0 = vcmask 556032   ;;  %v936_v0 = vld [vmem:[%s216_s28] sm:$0xff]  ;;  %v938_v1 = vld [vmem:[%s216_s28 + $0x8] sm:$0xff]  ;;  %v787_v11 = vmov 0.0|0.0   ;;  %vm788_vm1 = vmmov 0   ;;  %v263_v13 = vlaneseq }
  0x39   : > { %v248_v2 = vsel %vm247_vm0, %v938_v1, 0.0  ;;  %v942_v3 = vld [vmem:[%s216_s28 + $0x10] sm:$0xff]  ;;  %v944_v4 = vld [vmem:[%s216_s28 + $0x18] sm:$0xff]  ;;  %v258_v8 = vld [vmem:[%s1027_s1] sm:$0xff]  ;;  %630 = vmatprep.subr.bf16.mxu0 %v787_v11  ;;  %v789_v12 = vmov 0.0   ;;  %vm274_vm2 = vcmask 130112  }
  0x3a   : > { %v249_v5 = vadd.f32 %v248_v2, %v936_v0  ;;  %v252_v6 = vsel %vm247_vm0, %v944_v4, 0.0  ;;  %v259_v9 = vld [vmem:[%s1027_s1 + $0x8] sm:$0xff]  ;;  %622 = vmatprep.mubr.msk.f32.mxu0 %vm788_vm1, %v789_v12  ;;  %625 = vmatprep.subr.mxu1 %v789_v12  ;;  %v264_v14 = vand.u32 127, %v263_v13  ;;  %v266_v15 = vshrl.u32 %v263_v13, 7  ;;  %v350_v26 = vld [vmem:[%s1029_s3] sm:$0xf] }
  0x3b   : > { %v253_v7 = vadd.f32 %v252_v6, %v942_v3  ;;  %v631_v10 = vpack.c.bf16 %v259_v9, %v258_v8  ;;  %627 = vmatprep.mubr.msk.f32.mxu1 %vm788_vm1, %v789_v12  ;;  %vm276_vm3 = vcmask 130048   ;;  %vm356_vm4 = vcmask 1043456   ;;  %v260_v27 = vld [vmem:[%s1028_s2] sm:$0x1]  ;;  %s242_s13 = scalar_lea.vmem [#allocation5], %s600_s25  ;;  %s612_s26 = sshll.u32 %s844_s22, 9 }
  0x3c   : > { %250 = vadd.xlane.f32.xlu0 %v249_v5  ;;  %v269_v16 = vadd.s32 4294967288, %v264_v14  ;;  %v267_v18 = vsub.s32 %v264_v14, %v266_v15  ;;  %626 = vmatpush3.msk.msra.mxu1 %vm356_vm4, %v350_v26  ;;  %vm352_vm5 = vcmask 31744   ;;  %v351_v32 = vld [vmem:[%s1030_s4] sm:$0x1]  ;;  %v441_v40 = vsub.s32 0, %v266_v15  ;;  %s520_s17 = sshll.u32 %s242_s13, 4  ;;  %s982_s29 = scalar_lea.hbm %s1031_s5, %s612_s26  ;;  %s977_s17 = int_to_ptr.vmem [resolvable:$true] %s520_s17 }
  0x3d   : > { %632 = vmatpush3.bf16.msra.mxu0 %v631_v10  ;;  %s507_s22 = scalar_lea.sflag [#allocation4], %s926_s23  ;;  %s716_s12 = scalar_lea.vmem %s977_s17, 512 }
  0x3e   : > { %v272_v20 = vsub.s32 %v269_v16, %v266_v15  ;;  %p717_p6 = scmp.ne.s32.totalorder %s977_s17, %s716_s12  ;;  %p1038_p10 = scmp.ne.s32.totalorder %s1035_s30, 0 }
  0x3f   : > { %s790_s14 = smov [#allocation5]  }
  0x40   : > { %254 = vadd.xlane.f32.xlu0 %v253_v7  ;;  %p718_p11 = pnand %p717_p6, %p1038_p10  ;;  %s720_s15 = sshll.u32 %s790_s14, 4  ;;  %s721_s15 = int_to_ptr.vmem [resolvable:$false] %s720_s15 }
  0x41   : > { %s722_s16 = scalar_lea.vmem %s721_s15, 1024  ;;  %p723_p8 = scmp.lt.s32.totalorder %s977_s17, %s721_s15 }
  0x42   : > { %p719_p12 = pneg %p718_p11  ;;  %p724_p9 = scmp.lt.s32.totalorder %s722_s16, %s716_s12 }
  0x44   : > { %p725_p13 = por %p724_p9, %p723_p8 }
  0x46   : > { %p726_p1 = pnand %p725_p13, %p719_p12 }
  0xc9   : > { %v251_v17 = vpop.xlane.xlu0 %250 }
  0xca   : > { %v256_v19 = vmul.f32 0.0051020407, %v251_v17 }
  0xcc   : > { %v268_v23 = vrot.slane %v256_v19, %v267_v18 }
  0xcd   : > { %v255_v21 = vpop.xlane.xlu0 %254 }
  0xce   : > { %v257_v22 = vmul.f32 0.0051020407, %v255_v21 }
  0xd0   : > { %v273_v24 = vrot.slane %v257_v22, %v272_v20 }
  0xd2   : > { %v275_v25 = vsel %vm274_vm2, %v273_v24, %v268_v23 }
  0xd3   : > { %623 = vmatmul.mubr.msk.f32.vlgmr.msra.gmra.mrb[0].mxu0 %vm276_vm3, %v275_v25 }
 0x1a6   : > { %v345_v28 = vpop.f32.mrb[0].mxu0 }
 0x1a7   : > { %v346_v29 = vadd.f32 %v345_v28, %v260_v27  ;;  %v624_v30 = vpop.f32.mrb[1].mxu0 }
 0x1a9   : > { %v349_v31 = vmax.f32 %v346_v29, 0.0 }
 0x1ab   : > { %628 = vmatmul.mubr.msk.f32.vlgmr.msra.gmra.mrb[0].mxu1 %vm352_vm5, %v349_v31 }
 0x27e   : > { %v426_v33 = vpop.f32.mrb[0].mxu1 }
 0x27f   : > { %v427_v34 = vadd.f32 %v426_v33, %v351_v32  ;;  %v629_v35 = vpop.f32.mrb[1].mxu1 }
 0x281   : > { %v430_v36 = vadd.f32 3.0, %v427_v34 }
 0x283   : > { %v431_v37 = vmax.f32 %v430_v36, 0.0 }
 0x285   : > { %v432_v38 = vmin.f32 %v431_v37, 6.0 }
 0x287   : > { %v433_v39 = vmul.f32 0.16666667, %v432_v38 }
 0x289   : > { %v605_v41 = vadd.f32 -0.5, %v433_v39 }
 0x28b   : > { %v453_v42 = vrot.slane %v605_v41, %v441_v40  ;;  %v435_v43 = vmul.f32 2.0, %v605_v41 }
 0x28d   : > { %456 = vbcast.lane.b32.xlu1 %v453_v42, 272  ;;  %v465_v44 = vrot.slane %v435_v43, %v441_v40  ;;  %v436_v45 = vadd.f32 1.0, %v435_v43 }
 0x28f   : > { %468 = vbcast.lane.b32.xlu0 %v465_v44, 288  ;;  %v442_v46 = vrot.slane %v436_v45, %v441_v40 }
 0x291   : > { %460 = vbcast.lane.b32.xlu1 %v453_v42, 280 }
 0x295   : > { %476 = vbcast.lane.b32.xlu1 %v453_v42, 304 }
 0x299   : > { %472 = vbcast.lane.b32.xlu1 %v465_v44, 296 }
 0x29d   : > { %444 = vbcast.lane.b32.xlu1 %v442_v46, 256 }
 0x2a1   : > { %448 = vbcast.lane.b32.xlu1 %v442_v46, 264 }
 0x2a5   : > { %480 = vbcast.lane.b32.xlu1 %v453_v42, 312 }
 0x2ff   : > { %v457_v47 = vpop.permute.xlu1 %456 }
 0x301   : > { %v469_v51 = vpop.permute.xlu0 %468 }
 0x302   : > { %v490_v53 = vmul.f32 %v469_v51, %v936_v0  ;;  %v491_v54 = vmul.f32 %v469_v51, %v938_v1 }
 0x303   : > { %v461_v48 = vpop.permute.xlu1 %460 }
 0x307   : > { %v477_v49 = vpop.permute.xlu1 %476 }
 0x308   : > { %v494_v57 = vadd.f32 %v490_v53, %v477_v49  ;;  %v495_v58 = vadd.f32 %v491_v54, %v477_v49 }
 0x30b   : > { %v473_v50 = vpop.permute.xlu1 %472 }
 0x30c   : > { %v492_v6 = vmul.f32 %v473_v50, %v942_v3 }
 0x30f   : > { %v445_v52 = vpop.permute.xlu1 %444 }
 0x310   : > { %v482_v55 = vmul.f32 %v445_v52, %v936_v0  ;;  %v483_v56 = vmul.f32 %v445_v52, %v938_v1  ;;  %v493_v0 = vmul.f32 %v473_v50, %v944_v4 }
 0x312   : > { %v486_v59 = vadd.f32 %v482_v55, %v457_v47  ;;  %v487_v60 = vadd.f32 %v483_v56, %v457_v47 }
 0x313   : > { %v449_v61 = vpop.permute.xlu1 %448 }
 0x314   : > { %v498_v62 = vmax.f32 %v486_v59, %v494_v57  ;;  %v499_v63 = vmax.f32 %v487_v60, %v495_v58  ;;  %v484_v2 = vmul.f32 %v449_v61, %v942_v3  ;;  %v485_v5 = vmul.f32 %v449_v61, %v944_v4 }
 0x316   : > { %502 = vst [vmem:[%s242_s13] sm:$0xff] %v498_v62  ;;  %503 = vst.msk [vmem:[%s242_s13 + $0x8] sm:$0xff] %vm247_vm0, %v499_v63  ;;  %v488_v7 = vadd.f32 %v484_v2, %v461_v48  ;;  %v489_v8 = vadd.f32 %v485_v5, %v461_v48 }
 0x317   : > { %v481_v1 = vpop.permute.xlu1 %480 }
 0x318   : > { %v496_v9 = vadd.f32 %v492_v6, %v481_v1  ;;  %v497_v10 = vadd.f32 %v493_v0, %v481_v1 }
 0x31a   : > { %v500_v3 = vmax.f32 %v488_v7, %v496_v9  ;;  %v501_v4 = vmax.f32 %v489_v8, %v497_v10 }
 0x31c   : > { %504 = vst [vmem:[%s242_s13 + $0x10] sm:$0xff] %v500_v3  ;;  %505 = vst.msk [vmem:[%s242_s13 + $0x18] sm:$0xff] %vm247_vm0, %v501_v4 }
 0x31d   : > { %729 = shalt.err (!%p726_p1)
}
 0x31e   : > { %s730_s8 = scalar_lea.hbm %s982_s29, 512  ;;  %s734_s10 = scalar_lea.hbm %s1031_s5, 2048 }
 0x31f   : > { %p731_p3 = scmp.ne.s32.totalorder %s982_s29, %s730_s8  ;;  %p735_p0 = scmp.lt.u32.totalorder %s982_s29, %s1031_s5 }
 0x320   : > { %p736_p2 = scmp.lt.u32.totalorder %s734_s10, %s730_s8  ;;  %p738_p6 = scmp.lt.u32.totalorder %s730_s8, %s982_s29 }
 0x321   : > { %p732_p4 = pnand %p731_p3, %p1038_p10 }
 0x322   : > { %p737_p7 = por %p736_p2, %p735_p0 }
 0x323   : > { %p733_p5 = pneg %p732_p4 }
 0x324   : > { %p739_p11 = por %p738_p6, %p737_p7 }
 0x326   : > { %p740_p12 = pnand %p739_p11, %p733_p5 }
 0x328   : > { %743 = shalt.err (!%p740_p12)
}
 0x329   : > { %s791_s26 = smov 256   ;;  %s792_s25 = smov 16  }
 0x32a   : > { %635 = dma.vmem_to_hbm [thread:$0]  (%p1038_p10), %s977_s17, 512, %s982_s29, %s507_s22, %s791_s26, %s791_s26, %s792_s25  }
 0x32b PF: > { %p646_p8 = scmp.ge.s32.totalorder %s782_s21, 2  ;;  %s535_s28 = sand.u32 1, %s770_s18  }
 0x32c   : > { %p1039_p9 = scmp.ne.s32.totalorder %s1036_s6, 0  ;;  %s536_s12 = scalar_lea.sflag [#allocation4], %s535_s28 }
 0x32e   : > { %p642_p13 = pnand %p646_p8, %p1039_p9 }
 0x330   : > { %765 = dma.done.wait (!%p642_p13), %s536_s12, 512  }
 0x331   : > { %767 = vsyncadd (!%p642_p13), %s536_s12, 4294966784  ;;  %p18_p1 = scmp.ge.s32.totalorder %s848_s24, 6   ;;  %s1040_s18 = smov %s774_s19 }
 0x332   : > { %s1041_s19 = smov %s778_s20  ;;  %s1042_s20 = smov %s860_s27 }
 0x333   : > { %s1043_s21 = smov %s848_s24  ;;  %20 = sbr.rel (!%p18_p1) target bundleno = 5 (0x5), region = 85 }
 0x33a   :  { %541 = vsyncpa [#allocation3], 1 }
 0x33b   :  { %543 = vsyncpa [#allocation3 + $0x1], 1 }
 0x33c   :  { %544 = vsyncpa [#allocation4], 1 }
 0x33d   :  { %546 = vsyncpa [#allocation4 + $0x1], 1 }

</bundles_post_ra>
